<compile_context>
chip_gen: v6e
topology: v6e:2x2x1
jax: 0.10.0
libtpu: 0.0.40
codegen_flags: <defaults>
</compile_context>

<pallas_src>
import functools

import jax
import jax.numpy as jnp
from jax import lax
from jax.experimental import pallas as pl
from jax.experimental.pallas import tpu as pltpu

_LANES = 128
_FOLD_ROWS = 64                    # in-kernel chunk; multiple of 8/16/32 sublane units
_ROW_ALIGN = 64                    # tile-row granularity (== _FOLD_ROWS)
_VMEM_BUDGET = 12 * 1024 * 1024    # double-buffered bytes for the 3 streamed inputs


def _ranking_loss_kernel(o1_ref, o2_ref, t_ref, out_ref, *,
                         margin, grid_T, nblocks, tile_rows, last_rows,
                         fold_rows, has_partial, has_skip):
    """Accumulate the hinge sum of one (tile_rows, 128) tile into a (1, 8, 128) block.

    o1_ref/o2_ref/t_ref : VMEM tiles (tile_rows, 128), native dtype (upcast in-register)
    out_ref             : VMEM (1, 8, 128) f32 partial-sum block for this parallel
                          row-block; revisited across the inner ("arbitrary") grid axis.
    """
    p = pl.program_id(0)           # parallel row-block (megacore split on v7x)
    step = pl.program_id(1)        # sequential accumulation step
    blk = p * grid_T + step        # global block index (small ints, no overflow)

    @pl.when(step == 0)
    def _init():
        out_ref[...] = jnp.zeros_like(out_ref)

    m = jnp.float32(margin)

    def accum(valid_rows):
        # valid_rows: None for a full tile, or a static int (< tile_rows) for the single
        # partial last block (rows >= valid_rows hold undefined data and are masked).
        if valid_rows is None:
            n_chunks = tile_rows // fold_rows
        else:
            n_chunks = -(-valid_rows // fold_rows)

        def body(c, acc):
            r0 = pl.multiple_of(c * fold_rows, fold_rows)
            o1 = o1_ref[pl.ds(r0, fold_rows), :].astype(jnp.float32)
            o2 = o2_ref[pl.ds(r0, fold_rows), :].astype(jnp.float32)
            tg = t_ref[pl.ds(r0, fold_rows), :].astype(jnp.float32)
            diff = o1 - o2
            pos = jnp.maximum(m + diff, 0.0)     # relu(margin + diff)
            neg = jnp.maximum(m - diff, 0.0)     # relu(margin - diff)
            hinge = pos + tg * (neg - pos)       # == (1 - t)*pos + t*neg
            if valid_rows is not None:
                rows = r0 + lax.broadcasted_iota(jnp.int32, (fold_rows, _LANES), 0)
                hinge = jnp.where(rows < valid_rows, hinge, 0.0)
            # Fold (fold_rows, 128) -> (8, 128): pure vreg adds, bounded live range.
            return acc + jnp.sum(hinge.reshape(fold_rows // 8, 8, _LANES), axis=0)

        acc = lax.fori_loop(0, n_chunks, body,
                            jnp.zeros((8, _LANES), jnp.float32),
                            unroll=2 if n_chunks >= 2 else 1)
        out_ref[...] += acc[None, :, :]

    if not has_partial and not has_skip:
        accum(None)                               # steady state: zero branching overhead
    else:
        last_full = nblocks - 1 if has_partial else nblocks

        @pl.when(blk < last_full)
        def _full_blocks():
            accum(None)

        if has_partial:
            @pl.when(blk == nblocks - 1)
            def _partial_block():
                accum(last_rows)
        # blk >= nblocks (only possible when has_skip): clamped duplicate block, skipped.


def pairwise_ranking_loss(output1, output2, target, *, margin=0.1, max_tile_rows=None):
    """Pallas wrapper; works for any common shape/dtype of the three (same-shape) inputs."""
    assert output1.shape == output2.shape == target.shape
    n = int(output1.size)
    if n == 0:
        return jnp.float32(jnp.nan)

    C = _LANES
    R = -(-n // C)                                # rows of the logical (R, 128) slab
    lane_pad = R * C - n

    # Tile rows from a ~12 MiB double-buffered VMEM budget across the three inputs.
    row_bytes = C * (output1.dtype.itemsize + output2.dtype.itemsize
                     + target.dtype.itemsize)
    tr = _VMEM_BUDGET // (2 * row_bytes)
    tr = max(_ROW_ALIGN, (tr // _ROW_ALIGN) * _ROW_ALIGN)
    if max_tile_rows is not None:
        cap = max(_ROW_ALIGN, (int(max_tile_rows) // _ROW_ALIGN) * _ROW_ALIGN)
        tr = min(tr, cap)

    # Padded elements are constructed to contribute EXACTLY 0 to the hinge sum:
    #   o1 = L (L >= margin), o2 = 0, target = 1  ->  neg = 0, hinge = pos + (0 - pos) = 0.
    big = float(max(4.0 * abs(float(margin)), 1024.0))

    if R <= tr:
        # Small input: single full block over a row-padded slab (tiny copy, <= ~1 tile).
        R_slab = -(-R // _ROW_ALIGN) * _ROW_ALIGN
        total_pad = R_slab * C - n
        tr = R_slab
        nblocks, P, T = 1, 1, 1
        last_rows = tr
    else:
        # Large input: never pad rows; pad at most the ragged lane tail to the next row.
        R_slab = R
        total_pad = lane_pad
        nblocks = -(-R // tr)
        P = 2                       # outer "parallel" axis (2 TCs on v7x; harmless else)
        T = -(-nblocks // P)
        last_rows = R - (nblocks - 1) * tr

    has_partial = last_rows != tr
    has_skip = (P * T) != nblocks   # at most one trailing grid slot is clamped & skipped

    def prep(x, pad_val):
        flat = x.reshape(-1)
        if total_pad:
            flat = jnp.pad(flat, (0, total_pad), constant_values=pad_val)
        return flat.reshape(R_slab, C)

    o1_2d = prep(output1, big)
    o2_2d = prep(output2, 0)
    t_2d = prep(target, 1)

    kernel = functools.partial(
        _ranking_loss_kernel,
        margin=float(margin), grid_T=T, nblocks=nblocks, tile_rows=tr,
        last_rows=int(last_rows), fold_rows=_FOLD_ROWS,
        has_partial=bool(has_partial), has_skip=bool(has_skip))

    def row_index_map(p, s):
        # Clamp so the (rare) extra trailing slot re-reads the last block in-bounds;
        # the kernel skips its contribution.
        return (jnp.minimum(p * T + s, nblocks - 1), 0)

    row_spec = pl.BlockSpec((tr, C), row_index_map)
    out_spec = pl.BlockSpec((1, 8, C), lambda p, s: (p, 0, 0))

    cost = pl.CostEstimate(
        flops=9 * n,
        transcendentals=0,
        bytes_accessed=int(o1_2d.nbytes + o2_2d.nbytes + t_2d.nbytes) + P * 8 * C * 4)

    partials = pl.pallas_call(
        kernel,
        out_shape=jax.ShapeDtypeStruct((P, 8, C), jnp.float32),
        grid_spec=pltpu.PrefetchScalarGridSpec(
            num_scalar_prefetch=0,
            grid=(P, T),
            in_specs=[row_spec, row_spec, row_spec],
            out_specs=out_spec),
        compiler_params=pltpu.CompilerParams(
            dimension_semantics=("parallel", "arbitrary"),
            vmem_limit_bytes=32 * 1024 * 1024),
        cost_estimate=cost,
    )(o1_2d, o2_2d, t_2d)

    # Single cross-lane reduce + mean, done once outside the hot loop.
    return jnp.sum(partials) / jnp.float32(n)


def pairwise_ranking_loss_ref(output1, output2, target, margin=0.1):
    """Pure-JAX reference matching the PyTorch forward exactly (f32 math)."""
    o1 = output1.astype(jnp.float32)
    o2 = output2.astype(jnp.float32)
    t = target.astype(jnp.float32)
    diff = o1 - o2
    hinge = (1.0 - t) * jnp.maximum(margin + diff, 0.0) + t * jnp.maximum(
        margin - diff, 0.0)
    return jnp.mean(hinge)


if __name__ == "__main__":
    key = jax.random.PRNGKey(0)
    ks = jax.random.split(key, 12)

    def check(a, b, t, margin=0.1, **kw):
        got = jax.block_until_ready(pairwise_ranking_loss(a, b, t, margin=margin, **kw))
        want = pairwise_ranking_loss_ref(a, b, t, margin=margin)
        assert jnp.allclose(got, want, rtol=1e-5, atol=1e-6), (got, want)

    # Case 1: lane-aligned f32 (16 pairs x 128 scores), single-block path.
    a1 = jax.random.normal(ks[0], (16, 128), dtype=jnp.float32)
    b1 = jax.random.normal(ks[1], (16, 128), dtype=jnp.float32)
    t1 = jax.random.bernoulli(ks[2], 0.5, (16, 128)).astype(jnp.float32)
    check(a1, b1, t1)

    # Case 2: awkward small shape (not a multiple of 128), exercises lane padding.
    a2 = jax.random.normal(ks[3], (7, 37), dtype=jnp.float32)
    b2 = jax.random.normal(ks[4], (7, 37), dtype=jnp.float32)
    t2 = jax.random.bernoulli(ks[5], 0.5, (7, 37)).astype(jnp.float32)
    check(a2, b2, t2)

    # Case 3: bf16 inputs fed natively (upcast happens in-kernel, per chunk).
    check(a1.astype(jnp.bfloat16), b1.astype(jnp.bfloat16), t1.astype(jnp.bfloat16))

    # Case 4: multi-block path with a masked partial last block + ragged lane tail.
    a4 = jax.random.normal(ks[6], (3, 3333), dtype=jnp.float32)
    b4 = jax.random.normal(ks[7], (3, 3333), dtype=jnp.float32)
    t4 = jax.random.bernoulli(ks[8], 0.5, (3, 3333)).astype(jnp.float32)
    check(a4, b4, t4, max_tile_rows=64)

    # Case 5: odd block count -> exercises the clamped/skipped trailing grid slot.
    a5 = jax.random.normal(ks[9], (150, 128), dtype=jnp.float32)
    b5 = jax.random.normal(ks[10], (150, 128), dtype=jnp.float32)
    t5 = jax.random.bernoulli(ks[11], 0.5, (150, 128)).astype(jnp.float32)
    check(a5, b5, t5, max_tile_rows=64)

    print("KERNEL_OK")
</pallas_src>

<mosaic_0001>
module attributes {stable_mosaic.version = 11 : i64} {
  func.func @_ranking_loss_kernel(%arg0: i32, %arg1: i32, %arg2: memref<64x128xf32, #tpu.memory_space<vmem>>, %arg3: memref<64x128xf32, #tpu.memory_space<vmem>>, %arg4: memref<64x128xf32, #tpu.memory_space<vmem>>, %arg5: memref<1x8x128xf32, #tpu.memory_space<vmem>>) attributes {dimension_semantics = [#tpu.dimension_semantics<parallel>, #tpu.dimension_semantics<arbitrary>], iteration_bounds = array<i64: 1, 1>, scalar_prefetch = 0 : i64, scratch_operands = 0 : i64, tpu.core_type = #tpu.core_type<tc>, window_params = [{transform_indices = @transform_0, window_bounds = array<i64: 64, 128>}, {transform_indices = @transform_1, window_bounds = array<i64: 64, 128>}, {transform_indices = @transform_2, window_bounds = array<i64: 64, 128>}, {transform_indices = @transform_3, window_bounds = array<i64: 1, 8, 128>}]} {
    %c0_i32 = arith.constant 0 : i32
    %0 = arith.cmpi eq, %arg1, %c0_i32 : i32
    %1 = arith.extui %0 : i1 to i32
    %c0_i32_0 = arith.constant 0 : i32
    %2 = arith.cmpi ne, %1, %c0_i32_0 : i32
    scf.if %2 {
      %cst_14 = arith.constant 0.000000e+00 : f32
      %31 = vector.broadcast %cst_14 : f32 to vector<1x8x128xf32>
      %c0_15 = arith.constant 0 : index
      %c0_16 = arith.constant 0 : index
      %c0_17 = arith.constant 0 : index
      %32 = vector.load %arg5[%c0_15, %c0_16, %c0_17] : memref<1x8x128xf32, #tpu.memory_space<vmem>>, vector<1x8x128xf32>
      tpu.vector_store %arg5[%c0_15, %c0_16, %c0_17], %31 {strides = array<i32>} : memref<1x8x128xf32, #tpu.memory_space<vmem>>, vector<1x8x128xf32>,
    } else {
    }
    %cst = arith.constant 0.000000e+00 : f32
    %3 = vector.broadcast %cst : f32 to vector<8x128xf32>
    %cst_1 = arith.constant 1.000000e-01 : f32
    %c0_i32_2 = arith.constant 0 : i32
    %c64_i32 = arith.constant 64 : i32
    %4 = arith.muli %c0_i32_2, %c64_i32 : i32
    %5 = tpu.assume_multiple %4, 64 : i32
    %6 = arith.index_cast %5 : i32 to index
    %c0 = arith.constant 0 : index
    %7 = vector.load %arg2[%6, %c0] : memref<64x128xf32, #tpu.memory_space<vmem>>, vector<64x128xf32>
    %8 = arith.index_cast %5 : i32 to index
    %c0_3 = arith.constant 0 : index
    %9 = vector.load %arg3[%8, %c0_3] : memref<64x128xf32, #tpu.memory_space<vmem>>, vector<64x128xf32>
    %10 = arith.index_cast %5 : i32 to index
    %c0_4 = arith.constant 0 : index
    %11 = vector.load %arg4[%10, %c0_4] : memref<64x128xf32, #tpu.memory_space<vmem>>, vector<64x128xf32>
    %12 = arith.subf %7, %9 : vector<64x128xf32>
    %13 = vector.broadcast %cst_1 : f32 to vector<64x128xf32>
    %14 = arith.addf %13, %12 : vector<64x128xf32>
    %cst_5 = arith.constant 0.000000e+00 : f32
    %15 = vector.broadcast %cst_5 : f32 to vector<64x128xf32>
    %16 = arith.maximumf %14, %15 : vector<64x128xf32>
    %17 = vector.broadcast %cst_1 : f32 to vector<64x128xf32>
    %18 = arith.subf %17, %12 : vector<64x128xf32>
    %cst_6 = arith.constant 0.000000e+00 : f32
    %19 = vector.broadcast %cst_6 : f32 to vector<64x128xf32>
    %20 = arith.maximumf %18, %19 : vector<64x128xf32>
    %21 = arith.subf %20, %16 : vector<64x128xf32>
    %22 = arith.mulf %11, %21 : vector<64x128xf32>
    %23 = arith.addf %16, %22 : vector<64x128xf32>
    %24 = vector.shape_cast %23 : vector<64x128xf32> to vector<8x8x128xf32>
    %cst_7 = arith.constant dense<0.000000e+00> : vector<8x128xf32>
    %25 = vector.multi_reduction <add>, %24, %cst_7 [0] : vector<8x8x128xf32> to vector<8x128xf32>
    %26 = arith.addf %3, %25 : vector<8x128xf32>
    %c1_i32 = arith.constant 1 : i32
    %c0_8 = arith.constant 0 : index
    %c0_9 = arith.constant 0 : index
    %c0_10 = arith.constant 0 : index
    %27 = vector.load %arg5[%c0_8, %c0_9, %c0_10] : memref<1x8x128xf32, #tpu.memory_space<vmem>>, vector<1x8x128xf32>
    %28 = vector.shape_cast %26 : vector<8x128xf32> to vector<1x8x128xf32>
    %29 = arith.addf %27, %28 : vector<1x8x128xf32>
    %c0_11 = arith.constant 0 : index
    %c0_12 = arith.constant 0 : index
    %c0_13 = arith.constant 0 : index
    %30 = vector.load %arg5[%c0_11, %c0_12, %c0_13] : memref<1x8x128xf32, #tpu.memory_space<vmem>>, vector<1x8x128xf32>
    tpu.vector_store %arg5[%c0_11, %c0_12, %c0_13], %29 {strides = array<i32>} : memref<1x8x128xf32, #tpu.memory_space<vmem>>, vector<1x8x128xf32>,
    return
  }
  func.func @transform_0(%arg0: i32, %arg1: i32) -> (i32, i32) {
    %c1_i32 = arith.constant 1 : i32
    %0 = arith.muli %arg0, %c1_i32 : i32
    %1 = arith.addi %0, %arg1 : i32
    %c0_i32 = arith.constant 0 : i32
    %2 = arith.minsi %1, %c0_i32 : i32
    %c0_i32_0 = arith.constant 0 : i32
    %c0_i32_1 = arith.constant 0 : i32
    return %2, %c0_i32_0 : i32, i32
  }
  func.func @transform_1(%arg0: i32, %arg1: i32) -> (i32, i32) {
    %c1_i32 = arith.constant 1 : i32
    %0 = arith.muli %arg0, %c1_i32 : i32
    %1 = arith.addi %0, %arg1 : i32
    %c0_i32 = arith.constant 0 : i32
    %2 = arith.minsi %1, %c0_i32 : i32
    %c0_i32_0 = arith.constant 0 : i32
    %c0_i32_1 = arith.constant 0 : i32
    return %2, %c0_i32_0 : i32, i32
  }
  func.func @transform_2(%arg0: i32, %arg1: i32) -> (i32, i32) {
    %c1_i32 = arith.constant 1 : i32
    %0 = arith.muli %arg0, %c1_i32 : i32
    %1 = arith.addi %0, %arg1 : i32
    %c0_i32 = arith.constant 0 : i32
    %2 = arith.minsi %1, %c0_i32 : i32
    %c0_i32_0 = arith.constant 0 : i32
    %c0_i32_1 = arith.constant 0 : i32
    return %2, %c0_i32_0 : i32, i32
  }
  func.func @transform_3(%arg0: i32, %arg1: i32) -> (i32, i32, i32) {
    %c0_i32 = arith.constant 0 : i32
    %c0_i32_0 = arith.constant 0 : i32
    %c0_i32_1 = arith.constant 0 : i32
    return %arg0, %c0_i32, %c0_i32_0 : i32, i32, i32
  }
}

</mosaic_0001>

<bundles_post_ra>
// kernel: tpu_custom_call.1
= control target key start
LH: loop header
LB: loop body
LE: loop exit
PB: predicated region body
PF: predicated region fallthrough
CT: control target
= control target key end

     0   :  { %8 = vsyncpa [#allocation3], 0  ;;  %s343_s0 = inlined_call_operand.hbm [shape: f32[64,128], index: 0, kind: input, shape index: {}]   ;;  %s344_s1 = inlined_call_operand.hbm [shape: f32[64,128], index: 1, kind: input, shape index: {}]   ;;  %s345_s2 = inlined_call_operand.hbm [shape: f32[64,128], index: 2, kind: input, shape index: {}]   ;;  %s346_s3 = inlined_call_operand.hbm [shape: f32[1,8,128], index: 3, kind: output, shape index: {}]  }
   0x1   :  { %9 = vsyncpa [#allocation6], 0 }
   0x2   :  { %10 = vsyncpa [#allocation4], 0  ;;  %s305_s12 = smov [#allocation5]   ;;  %s306_s14 = smov [#allocation2]  }
   0x3   :  { %s40_s13 = sshll.u32 %s305_s12, 4  ;;  %s22_s15 = sshll.u32 %s306_s14, 4  ;;  %s41_s13 = int_to_ptr.vmem [resolvable:$true] %s40_s13  ;;  %s23_s15 = int_to_ptr.vmem [resolvable:$true] %s22_s15 }
   0x4   :  { %s227_s16 = scalar_lea.vmem %s41_s13, 1024  ;;  %p232_p1 = scmp.lt.s32.totalorder %s41_s13, %s41_s13 }
   0x5   :  { %p228_p0 = scmp.ne.s32.totalorder %s41_s13, %s227_s16  ;;  %p233_p2 = scmp.lt.s32.totalorder %s227_s16, %s227_s16 }
   0x7   :  { %p234_p3 = por %p233_p2, %p232_p1 }
   0x9   :  { %p235_p4 = pnand %p234_p3, %p228_p0 }
   0xb   :  { %238 = shalt.err (!%p235_p4)
}
   0xc   :  { %s307_s17 = smov 128   ;;  %s308_s18 = smov 8  }
   0xd   :  { %46 = dma.hbm_to_vmem [thread:$0]  %s344_s1, 1024, %s41_s13, [#allocation6], %s307_s17, %s307_s17, %s308_s18  }
   0xe   :  { %s247_s21 = scalar_lea.vmem %s23_s15, 1024  ;;  %p252_p6 = scmp.lt.s32.totalorder %s23_s15, %s23_s15 }
   0xf   :  { %p248_p5 = scmp.ne.s32.totalorder %s23_s15, %s247_s21  ;;  %p253_p7 = scmp.lt.s32.totalorder %s247_s21, %s247_s21 }
  0x11   :  { %p254_p8 = por %p253_p7, %p252_p6 }
  0x13   :  { %p255_p9 = pnand %p254_p8, %p248_p5 }
  0x15   :  { %258 = shalt.err (!%p255_p9)
}
  0x16   :  { %28 = dma.hbm_to_vmem [thread:$0]  %s343_s0, 1024, %s23_s15, [#allocation3], %s307_s17, %s307_s17, %s308_s18  }
  0x17   :  { %s309_s24 = smov [#allocation7]  }
  0x18   :  { %s58_s25 = sshll.u32 %s309_s24, 4  ;;  %s59_s25 = int_to_ptr.vmem [resolvable:$true] %s58_s25 }
  0x19   :  { %s267_s26 = scalar_lea.vmem %s59_s25, 1024  ;;  %p272_p11 = scmp.lt.s32.totalorder %s59_s25, %s59_s25 }
  0x1a   :  { %p268_p10 = scmp.ne.s32.totalorder %s59_s25, %s267_s26  ;;  %p273_p12 = scmp.lt.s32.totalorder %s267_s26, %s267_s26 }
  0x1c   :  { %p274_p13 = por %p273_p12, %p272_p11 }
  0x1e   :  { %p275_p0 = pnand %p274_p13, %p268_p10 }
  0x20   :  { %278 = shalt.err (!%p275_p0)
}
  0x21   :  { %64 = dma.hbm_to_vmem [thread:$0]  %s345_s2, 1024, %s59_s25, [#allocation6], %s307_s17, %s307_s17, %s308_s18  }
  0x22   :  { %299 = dma.done.wait [#allocation3], 1024  }
  0x23   :  { %300 = vsyncadd [#allocation3], 4294966272 }
  0x24   :  { %301 = dma.done.wait [#allocation6], 2048  }
  0x25   :  { %302 = vsyncadd [#allocation6], 4294965248  ;;  %v91_v0 = vld [vmem:[#allocation2] sm:$0xff]  ;;  %v92_v1 = vld [vmem:[#allocation2 + $0x8] sm:$0xff]  ;;  %s310_s0 = smov [#allocation8]  }
  0x26   :  { %v93_v2 = vld [vmem:[#allocation2 + $0x10] sm:$0xff]  ;;  %v94_v3 = vld [vmem:[#allocation2 + $0x18] sm:$0xff]  ;;  %v95_v4 = vld [vmem:[#allocation2 + $0x20] sm:$0xff]  ;;  %s196_s2 = sshll.u32 %s310_s0, 4  ;;  %s197_s2 = int_to_ptr.vmem [resolvable:$true] %s196_s2 }
  0x27   :  { %v96_v5 = vld [vmem:[#allocation2 + $0x28] sm:$0xff]  ;;  %v97_v6 = vld [vmem:[#allocation2 + $0x30] sm:$0xff]  ;;  %v98_v7 = vld [vmem:[#allocation2 + $0x38] sm:$0xff]  ;;  %s279_s28 = scalar_lea.vmem %s197_s2, 128  ;;  %p284_p2 = scmp.lt.s32.totalorder %s197_s2, %s197_s2 }
  0x28   :  { %v99_v8 = vld [vmem:[#allocation5] sm:$0xff]  ;;  %v100_v9 = vld [vmem:[#allocation5 + $0x8] sm:$0xff]  ;;  %v101_v10 = vld [vmem:[#allocation5 + $0x10] sm:$0xff]  ;;  %p280_p1 = scmp.ne.s32.totalorder %s197_s2, %s279_s28  ;;  %p285_p3 = scmp.lt.s32.totalorder %s279_s28, %s279_s28 }
  0x29   :  { %v102_v11 = vld [vmem:[#allocation5 + $0x18] sm:$0xff]  ;;  %v115_v12 = vsub.f32 %v91_v0, %v99_v8  ;;  %v103_v13 = vld [vmem:[#allocation5 + $0x20] sm:$0xff]  ;;  %v104_v14 = vld [vmem:[#allocation5 + $0x28] sm:$0xff]  ;;  %v116_v16 = vsub.f32 %v92_v1, %v100_v9  ;;  %v117_v17 = vsub.f32 %v93_v2, %v101_v10 }
  0x2a   :  { %v105_v15 = vld [vmem:[#allocation5 + $0x30] sm:$0xff]  ;;  %v118_v18 = vsub.f32 %v94_v3, %v102_v11  ;;  %v106_v19 = vld [vmem:[#allocation5 + $0x38] sm:$0xff]  ;;  %v119_v20 = vsub.f32 %v95_v4, %v103_v13  ;;  %v120_v21 = vsub.f32 %v96_v5, %v104_v14  ;;  %v107_v48 = vld [vmem:[#allocation7] sm:$0xff]  ;;  %p286_p4 = por %p285_p3, %p284_p2 }
  0x2b   :  { %v121_v22 = vsub.f32 %v97_v6, %v105_v15  ;;  %v123_v23 = vadd.f32 0.1, %v115_v12  ;;  %v122_v24 = vsub.f32 %v98_v7, %v106_v19  ;;  %v124_v25 = vadd.f32 0.1, %v116_v16  ;;  %v108_v49 = vld [vmem:[#allocation7 + $0x8] sm:$0xff]  ;;  %v109_v54 = vld [vmem:[#allocation7 + $0x10] sm:$0xff] }
  0x2c   :  { %v125_v26 = vadd.f32 0.1, %v117_v17  ;;  %v126_v27 = vadd.f32 0.1, %v118_v18  ;;  %v127_v28 = vadd.f32 0.1, %v119_v20  ;;  %p287_p5 = pnand %p286_p4, %p280_p1 }
  0x2d   :  { %v128_v29 = vadd.f32 0.1, %v120_v21  ;;  %v129_v30 = vadd.f32 0.1, %v121_v22  ;;  %v130_v31 = vadd.f32 0.1, %v122_v24 }
  0x2e   :  { %v131_v32 = vmax.f32 %v123_v23, 0.0  ;;  %v132_v33 = vmax.f32 %v124_v25, 0.0  ;;  %v133_v34 = vmax.f32 %v125_v26, 0.0  ;;  %v134_v35 = vmax.f32 %v126_v27, 0.0  ;;  %v110_v55 = vld [vmem:[#allocation7 + $0x18] sm:$0xff]  ;;  %v111_v60 = vld [vmem:[#allocation7 + $0x20] sm:$0xff] }
  0x2f   :  { %v139_v36 = vsub.f32 0.1, %v115_v12  ;;  %v135_v37 = vmax.f32 %v127_v28, 0.0  ;;  %v136_v38 = vmax.f32 %v128_v29, 0.0  ;;  %v140_v39 = vsub.f32 0.1, %v116_v16 }
  0x30   :  { %v141_v40 = vsub.f32 0.1, %v117_v17  ;;  %v142_v41 = vsub.f32 0.1, %v118_v18  ;;  %v143_v42 = vsub.f32 0.1, %v119_v20 }
  0x31   :  { %v144_v43 = vsub.f32 0.1, %v120_v21  ;;  %v145_v44 = vsub.f32 0.1, %v121_v22  ;;  %v146_v45 = vsub.f32 0.1, %v122_v24 }
  0x32   :  { %v147_v46 = vmax.f32 %v139_v36, 0.0  ;;  %v148_v47 = vmax.f32 %v140_v39, 0.0  ;;  %v149_v50 = vmax.f32 %v141_v40, 0.0  ;;  %v150_v51 = vmax.f32 %v142_v41, 0.0  ;;  %v112_v5 = vld [vmem:[#allocation7 + $0x28] sm:$0xff]  ;;  %v113_v12 = vld [vmem:[#allocation7 + $0x30] sm:$0xff] }
  0x33   :  { %v151_v52 = vmax.f32 %v143_v42, 0.0  ;;  %v152_v53 = vmax.f32 %v144_v43, 0.0  ;;  %v137_v56 = vmax.f32 %v129_v30, 0.0  ;;  %v153_v57 = vmax.f32 %v145_v44, 0.0  ;;  %v114_v18 = vld [vmem:[#allocation7 + $0x38] sm:$0xff] }
  0x34   :  { %v155_v58 = vsub.f32 %v147_v46, %v131_v32  ;;  %v156_v59 = vsub.f32 %v148_v47, %v132_v33  ;;  %v138_v61 = vmax.f32 %v130_v31, 0.0  ;;  %v157_v62 = vsub.f32 %v149_v50, %v133_v34 }
  0x35   :  { %v158_v63 = vsub.f32 %v150_v51, %v134_v35  ;;  %v159_v0 = vsub.f32 %v151_v52, %v135_v37  ;;  %v154_v1 = vmax.f32 %v146_v45, 0.0  ;;  %v160_v2 = vsub.f32 %v152_v53, %v136_v38 }
  0x36   :  { %v163_v3 = vmul.f32 %v155_v58, %v107_v48  ;;  %v164_v4 = vmul.f32 %v156_v59, %v108_v49  ;;  %v165_v6 = vmul.f32 %v157_v62, %v109_v54  ;;  %v161_v8 = vsub.f32 %v153_v57, %v137_v56 }
  0x37   :  { %v166_v7 = vmul.f32 %v158_v63, %v110_v55  ;;  %v167_v9 = vmul.f32 %v159_v0, %v111_v60  ;;  %v162_v14 = vsub.f32 %v154_v1, %v138_v61  ;;  %v168_v15 = vmul.f32 %v160_v2, %v112_v5 }
  0x38   :  { %v171_v10 = vadd.f32 %v163_v3, %v131_v32  ;;  %v172_v11 = vadd.f32 %v164_v4, %v132_v33  ;;  %v173_v13 = vadd.f32 %v165_v6, %v133_v34  ;;  %v169_v19 = vmul.f32 %v161_v8, %v113_v12 }
  0x39   :  { %v174_v16 = vadd.f32 %v166_v7, %v134_v35  ;;  %v175_v20 = vadd.f32 %v167_v9, %v135_v37  ;;  %v170_v22 = vmul.f32 %v162_v14, %v114_v18  ;;  %v176_v23 = vadd.f32 %v168_v15, %v136_v38 }
  0x3a   :  { %v179_v17 = vadd.f32 %v172_v11, %v171_v10  ;;  %v177_v25 = vadd.f32 %v169_v19, %v137_v56 }
  0x3b   :  { %v178_v27 = vadd.f32 %v170_v22, %v138_v61 }
  0x3c   :  { %v180_v21 = vadd.f32 %v179_v17, %v173_v13 }
  0x3e   :  { %v181_v24 = vadd.f32 %v180_v21, %v174_v16 }
  0x40   :  { %v182_v26 = vadd.f32 %v181_v24, %v175_v20 }
  0x42   :  { %v183_v28 = vadd.f32 %v182_v26, %v176_v23 }
  0x44   :  { %v184_v29 = vadd.f32 %v183_v28, %v177_v25 }
  0x46   :  { %v185_v30 = vadd.f32 %v184_v29, %v178_v27 }
  0x48   :  { %189 = vst [vmem:[#allocation8] sm:$0xff] %v185_v30 }
  0x49   :  { %290 = shalt.err (!%p287_p5)
}
  0x4a   :  { %199 = dma.vmem_to_hbm [thread:$0]  %s197_s2, 128, %s346_s3, [#allocation4]  }
  0x4b   :  { %303 = dma.done.wait [#allocation4], 128  }
  0x4c   :  { %304 = vsyncadd [#allocation4], 4294967168 }
  0x4d   :  { %203 = vsyncpa [#allocation3], 1 }
  0x4e   :  { %204 = vsyncpa [#allocation6], 1 }
  0x4f   :  { %205 = vsyncpa [#allocation4], 1 }

</bundles_post_ra>
